<compile_context>
chip_gen: v7x
topology: tpu7x:2x2x1
jax: 0.10.0
libtpu: 0.0.40
codegen_flags: <defaults>
</compile_context>

<pallas_src>
import jax
import jax.numpy as jnp
from jax.experimental import pallas as pl
from jax.experimental.pallas import tpu as pltpu


IN = 10
OUT = 10
K_PAD = 16    # IN padded to f32 sublane multiple (8)
N_PAD = 128   # OUT padded to one lane-dense vreg width


def expert_kernel(x_ref, wt_ref, b_ref, o_ref):
    # x: (B, K_PAD), wt: (K_PAD, N_PAD) pre-transposed, b: (1, N_PAD).
    x = x_ref[...]
    wt = wt_ref[...]
    b = b_ref[...]
    # [B, K] @ [K, N] on the MXU, f32 accumulate. RHS is already [K, N]
    # (pre-transposed in one-time prep), so no in-kernel relayout.
    y = jnp.dot(
        x, wt,
        preferred_element_type=jnp.float32,
        precision=jax.lax.Precision.HIGHEST,
    )
    y = y + b                      # broadcast (1, N_PAD) over batch, f32
    o_ref[...] = jnp.maximum(y, 0.0).astype(o_ref.dtype)


def prepare_expert_params(w, b):
    """One-time parameter prep (NOT in the hot path).

    w: (OUT, IN) f32 (PyTorch nn.Linear layout), b: (OUT,) f32.
    Returns wt_padded: (K_PAD, N_PAD), b_padded: (1, N_PAD).
    Padded K rows and N columns are zero, so relu(x_pad @ wt_pad + b_pad)
    matches the unpadded math exactly in the first OUT lanes and is 0 in the
    pad lanes.
    """
    wt = jnp.pad(w.T.astype(jnp.float32), ((0, K_PAD - IN), (0, N_PAD - OUT)))
    b2 = jnp.pad(b.astype(jnp.float32).reshape(1, OUT), ((0, 0), (0, N_PAD - OUT)))
    return wt, b2


def pad_input(x):
    """Zero-pad activations (B, IN) -> (B, K_PAD). Done outside the jitted forward."""
    B = x.shape[0]
    return jnp.pad(x, ((0, 0), (0, K_PAD - IN)))


def simple_expert_fwd(x_padded, wt_padded, b_padded):
    """Hot path: exactly one pallas_call. Returns the lane-padded (B, N_PAD) output.

    Consumers should slice [:, :OUT] lazily (or accept the padded lanes, which
    are exactly zero).
    """
    B = x_padded.shape[0]
    vmem = pl.BlockSpec(memory_space=pltpu.MemorySpace.VMEM)

    bytes_accessed = 4 * (x_padded.size + wt_padded.size + b_padded.size + B * N_PAD)
    return pl.pallas_call(
        expert_kernel,
        out_shape=jax.ShapeDtypeStruct((B, N_PAD), x_padded.dtype),
        in_specs=[vmem, vmem, vmem],
        out_specs=vmem,
        cost_estimate=pl.CostEstimate(
            flops=2 * B * IN * OUT,      # true work, not padded
            transcendentals=0,
            bytes_accessed=bytes_accessed,
        ),
    )(x_padded, wt_padded, b_padded)


def reference(x, w, b):
    return jnp.maximum(x @ w.T + b, 0.0)


if __name__ == "__main__":
    key = jax.random.PRNGKey(0)
    kx, kw, kb = jax.random.split(key, 3)

    # Module implies: x (1, 10), fc1.weight (10, 10), fc1.bias (10,)
    x = jax.random.uniform(kx, (1, IN), dtype=jnp.float32)  # torch.rand analogue
    # Deterministic init mimicking nn.Linear default (uniform in +/- 1/sqrt(fan_in)).
    bound = 1.0 / (IN ** 0.5)
    w = jax.random.uniform(kw, (OUT, IN), minval=-bound, maxval=bound, dtype=jnp.float32)
    b = jax.random.uniform(kb, (OUT,), minval=-bound, maxval=bound, dtype=jnp.float32)

    # One-time parameter prep (transpose + pad), outside the hot path.
    wt_p, b_p = prepare_expert_params(w, b)
    wt_p, b_p = jax.block_until_ready((wt_p, b_p))

    # Stage the input once (padding K 10 -> 16).
    x_p = jax.block_until_ready(pad_input(x))

    # Jitted hot path: just the pallas_call.
    fwd = jax.jit(simple_expert_fwd)
    out_padded = fwd(x_p, wt_p, b_p)
    jax.block_until_ready(out_padded)

    # Lazy consumer-side slice back to the module's (1, 10) output.
    out = out_padded[:, :OUT]

    ref = reference(x, w, b)
    assert out.shape == (1, OUT)
    assert jnp.allclose(out, ref, atol=1e-5, rtol=1e-5)
    # Pad lanes are exactly zero (relu(0 + 0)).
    assert jnp.all(out_padded[:, OUT:] == 0.0)
    print("KERNEL_OK")
</pallas_src>

<mosaic_0001>
module attributes {stable_mosaic.version = 11 : i64} {
  func.func @expert_kernel(%arg0: memref<1x16xf32, #tpu.memory_space<vmem>>, %arg1: memref<16x128xf32, #tpu.memory_space<vmem>>, %arg2: memref<1x128xf32, #tpu.memory_space<vmem>>, %arg3: memref<1x128xf32, #tpu.memory_space<vmem>>) attributes {dimension_semantics = [], scalar_prefetch = 0 : i64, scratch_operands = 0 : i64, tpu.core_type = #tpu.core_type<tc>} {
    %c0 = arith.constant 0 : index
    %c0_0 = arith.constant 0 : index
    %0 = vector.load %arg0[%c0, %c0_0] : memref<1x16xf32, #tpu.memory_space<vmem>>, vector<1x16xf32>
    %c0_1 = arith.constant 0 : index
    %c0_2 = arith.constant 0 : index
    %1 = vector.load %arg1[%c0_1, %c0_2] : memref<16x128xf32, #tpu.memory_space<vmem>>, vector<16x128xf32>
    %c0_3 = arith.constant 0 : index
    %c0_4 = arith.constant 0 : index
    %2 = vector.load %arg2[%c0_3, %c0_4] : memref<1x128xf32, #tpu.memory_space<vmem>>, vector<1x128xf32>
    %cst = arith.constant dense<0.000000e+00> : vector<1x128xf32>
    %3 = tpu.matmul %0, %1, %cst {dimension_numbers = #tpu.dot_dimension_numbers<[1], [0], [0], [1], [0, 0, 1, 1], [], []>, precision = #tpu.contract_precision<fp32>} : vector<1x16xf32>, vector<16x128xf32>, vector<1x128xf32> -> vector<1x128xf32>
    %4 = arith.addf %3, %2 : vector<1x128xf32>
    %cst_5 = arith.constant 0.000000e+00 : f32
    %5 = vector.broadcast %cst_5 : f32 to vector<1x128xf32>
    %6 = arith.maximumf %4, %5 : vector<1x128xf32>
    %c0_6 = arith.constant 0 : index
    %c0_7 = arith.constant 0 : index
    %7 = vector.load %arg3[%c0_6, %c0_7] : memref<1x128xf32, #tpu.memory_space<vmem>>, vector<1x128xf32>
    tpu.vector_store %arg3[%c0_6, %c0_7], %6 {strides = array<i32>} : memref<1x128xf32, #tpu.memory_space<vmem>>, vector<1x128xf32>,
    return
  }
}

</mosaic_0001>

<bundles_post_ra>
// kernel: simple_expert_fwd.1
= control target key start
LH: loop header
LB: loop body
LE: loop exit
PB: predicated region body
PF: predicated region fallthrough
CT: control target
= control target key end

     0   :  { %8 = vsyncpa [#allocation3], 0  ;;  %s774_s0 = inlined_call_operand.hbm [shape: f32[1,16], index: 0, kind: input, shape index: {}]   ;;  %s775_s1 = inlined_call_operand.hbm [shape: f32[16,128], index: 1, kind: input, shape index: {}]   ;;  %s776_s2 = inlined_call_operand.vmem [shape: f32[1,128], index: 2, kind: input, shape index: {}]   ;;  %s777_s3 = inlined_call_operand.hbm [shape: f32[1,128], index: 3, kind: output, shape index: {}]  }
   0x1   :  { %9 = vsyncpa [#allocation6], 0 }
   0x2   :  { %10 = vsyncpa [#allocation4], 0  ;;  %s694_s12 = smov [#allocation2]   ;;  %s695_s14 = smov [#allocation5]  }
   0x3   :  { %s17_s13 = sshll.u32 %s694_s12, 4  ;;  %s26_s15 = sshll.u32 %s695_s14, 4  ;;  %s18_s13 = int_to_ptr.vmem [resolvable:$true] %s17_s13  ;;  %s722_s15 = int_to_ptr.vmem [resolvable:$true] %s26_s15 }
   0x4   :  { %s622_s18 = scalar_lea.hbm %s774_s0, 16 }
   0x5   :  { %p623_p0 = scmp.ne.s32.totalorder %s774_s0, %s622_s18  ;;  %p626_p1 = scmp.lt.u32.totalorder %s622_s18, %s774_s0 }
   0x7   :  { %p628_p2 = pnand %p626_p1, %p623_p0 }
   0x9   :  { %631 = shalt.err (!%p628_p2)
}
   0xa   :  { %s632_s23 = scalar_lea.vmem %s18_s13, 16  ;;  %s636_s24 = scalar_lea.vmem %s18_s13, 32 }
   0xb   :  { %p633_p3 = scmp.ne.s32.totalorder %s18_s13, %s632_s23  ;;  %p637_p4 = scmp.lt.s32.totalorder %s18_s13, %s18_s13 }
   0xc   :  { %p638_p5 = scmp.lt.s32.totalorder %s636_s24, %s632_s23 }
   0xe   :  { %p639_p6 = por %p638_p5, %p637_p4 }
  0x10   :  { %p640_p7 = pnand %p639_p6, %p633_p3 }
  0x12   :  { %643 = shalt.err (!%p640_p7)
}
  0x13   :  { %20 = dma.hbm_to_vmem [thread:$0]  %s774_s0, 16, %s18_s13, [#allocation3]  }
  0x14   :  { %s644_s29 = scalar_lea.hbm %s775_s1, 256 }
  0x15   :  { %p645_p8 = scmp.ne.s32.totalorder %s775_s1, %s644_s29  ;;  %p648_p9 = scmp.lt.u32.totalorder %s644_s29, %s775_s1 }
  0x17   :  { %p650_p10 = pnand %p648_p9, %p645_p8 }
  0x19   :  { %653 = shalt.err (!%p650_p10)
}
  0x1a   :  { %s654_s7 = scalar_lea.vmem %s722_s15, 256  ;;  %p659_p12 = scmp.lt.s32.totalorder %s722_s15, %s722_s15 }
  0x1b   :  { %p655_p11 = scmp.ne.s32.totalorder %s722_s15, %s654_s7  ;;  %p660_p13 = scmp.lt.s32.totalorder %s654_s7, %s654_s7 }
  0x1d   :  { %p661_p0 = por %p660_p13, %p659_p12 }
  0x1f   :  { %p662_p1 = pnand %p661_p0, %p655_p11 }
  0x21   :  { %665 = shalt.err (!%p662_p1)
}
  0x22   :  { %s696_s0 = smov 128   ;;  %s697_s8 = smov 8  }
  0x23   :  { %32 = dma.hbm_to_vmem [thread:$0]  %s775_s1, 256, %s722_s15, [#allocation6], %s696_s0, %s696_s0, %s697_s8  }
  0x24   :  { %688 = dma.done.wait [#allocation3], 16  }
  0x25   :  { %689 = vsyncadd [#allocation3], 4294967280 }
  0x26   :  { %690 = dma.done.wait [#allocation6], 256  }
  0x27   :  { %691 = vsyncadd [#allocation6], 4294967040  ;;  %v698_v0 = vmov 0.0|0.0   ;;  %vm699_vm0 = vmmov 0   ;;  %v700_v1 = vmov 0.0   ;;  %vm45_vm1 = vcmask 130048  }
  0x28   :  { %595 = vmatprep.subr.bf16.mxu0 %v698_v0  ;;  %569 = vmatprep.mubr.msk.f32.mxu0 %vm699_vm0, %v700_v1  ;;  %v42_v2 = vld [vmem:[#allocation5] sm:$0xff]  ;;  %v43_v3 = vld [vmem:[#allocation5 + $0x8] sm:$0xff]  ;;  %v41_v4 = vld [vmem:[#allocation2] sm:$0x1]  ;;  %s701_s12 = smov [#allocation7]  }
  0x29   :  { %586 = vmatprep.subr.bf16.mxu1 %v698_v0  ;;  %548 = vmatprep.mubr.msk.f32.mxu1 %vm699_vm0, %v700_v1  ;;  %v50_v5 = vand.u32 4294901760, %v42_v2  ;;  %v53_v6 = vand.u32 4294901760, %v43_v3  ;;  %v47_v7 = vsel %vm45_vm1, %v41_v4, 0  ;;  %v44_v27 = vld [vmem:[%s776_s2] sm:$0x1]  ;;  %s516_s13 = sshll.u32 %s701_s12, 4  ;;  %s517_s13 = int_to_ptr.vmem [resolvable:$true] %s516_s13 }
  0x2a   :  { %v116_v8 = vand.u32 4294901760, %v47_v7  ;;  %s666_s14 = scalar_lea.vmem %s517_s13, 16  ;;  %s670_s15 = scalar_lea.vmem %s517_s13, 32 }
  0x2b   :  { %v587_v9 = vpack.c.bf16 %v53_v6, %v50_v5  ;;  %v128_v10 = vsub.f32 %v42_v2, %v50_v5  ;;  %v135_v11 = vsub.f32 %v43_v3, %v53_v6  ;;  %p667_p2 = scmp.ne.s32.totalorder %s517_s13, %s666_s14  ;;  %p671_p3 = scmp.lt.s32.totalorder %s517_s13, %s517_s13 }
  0x2c   :  { %v117_v12 = vsub.f32 %v47_v7, %v116_v8  ;;  %p672_p4 = scmp.lt.s32.totalorder %s670_s15, %s666_s14 }
  0x2d   :  { %597 = vmatpush3.bf16.msra.mxu0 %v587_v9  ;;  %588 = vmatpush3.bf16.msra.mxu1 %v587_v9  ;;  %v129_v13 = vand.u32 4294901760, %v128_v10  ;;  %v136_v14 = vand.u32 4294901760, %v135_v11  ;;  %v593_v24 = vpack.c.bf16 %v135_v11, %v128_v10 }
  0x2e   :  { %v118_v15 = vand.u32 4294901760, %v117_v12  ;;  %589 = vmatprep.subr.bf16.mxu1 %v698_v0  ;;  %598 = vmatprep.subr.bf16.mxu0 %v698_v0  ;;  %p673_p5 = por %p672_p4, %p671_p3 }
  0x2f   :  { %v130_v16 = vsub.f32 %v128_v10, %v129_v13  ;;  %v137_v17 = vsub.f32 %v135_v11, %v136_v14  ;;  %v599_v18 = vpack.c.bf16 %v136_v14, %v129_v13 }
  0x30   :  { %570 = vmatmul.mubr.f32.vlgmr.msra.gmra.mrb[0].mxu0 %v118_v15  ;;  %v119_v19 = vsub.f32 %v117_v12, %v118_v15  ;;  %p674_p6 = pnand %p673_p5, %p667_p2 }
  0x31   :  { %v131_v20 = vand.u32 4294901760, %v130_v16  ;;  %v138_v21 = vand.u32 4294901760, %v137_v17  ;;  %600 = vmatpush3.bf16.msra.mxu0 %v599_v18  ;;  %576 = vmatprep.mubr.msk.f32.mxu0 %vm699_vm0, %v700_v1 }
  0x32   :  { %v120_v22 = vand.u32 4294901760, %v119_v19  ;;  %601 = vmatprep.subr.bf16.mxu0 %v698_v0 }
  0x33   :  { %v590_v23 = vpack.c.bf16 %v138_v21, %v131_v20 }
  0x34   :  { %549 = vmatmul.mubr.f32.vlgmr.msra.gmra.mrb[0].mxu1 %v120_v22 }
  0x35   :  { %591 = vmatpush3.bf16.msra.mxu1 %v590_v23  ;;  %555 = vmatprep.mubr.msk.f32.mxu1 %vm699_vm0, %v700_v1 }
  0x36   :  { %592 = vmatprep.subr.bf16.mxu1 %v698_v0 }
  0x38   :  { %577 = vmatmul.mubr.f32.vlgmr.msra.gmra.mrb[0].mxu0 %v116_v8 }
  0x39   :  { %603 = vmatpush3.bf16.msra.mxu0 %v587_v9  ;;  %583 = vmatprep.mubr.msk.f32.mxu0 %vm699_vm0, %v700_v1 }
  0x3c   :  { %556 = vmatmul.mubr.f32.vlgmr.msra.gmra.mrb[0].mxu1 %v116_v8 }
  0x3d   :  { %594 = vmatpush3.bf16.msra.mxu1 %v593_v24  ;;  %562 = vmatprep.mubr.msk.f32.mxu1 %vm699_vm0, %v700_v1 }
  0x40   :  { %584 = vmatmul.mubr.f32.vlgmr.msra.gmra.mrb[0].mxu0 %v116_v8 }
  0x44   :  { %563 = vmatmul.mubr.f32.vlgmr.msra.gmra.mrb[0].mxu1 %v117_v12 }
 0x113   :  { %v504_v25 = vpop.f32.mrb[0].mxu0 }
 0x114   :  { %v585_v26 = vpop.f32.mrb[1].mxu0 }
 0x117   :  { %v279_v28 = vpop.f32.mrb[0].mxu1 }
 0x118   :  { %v604_v29 = vadd.f32 %v279_v28, %v44_v27  ;;  %v564_v30 = vpop.f32.mrb[1].mxu1 }
 0x11a   :  { %v605_v31 = vadd.f32 %v604_v29, %v504_v25 }
 0x11c   :  { %v508_v32 = vmax.f32 %v605_v31, 0.0 }
 0x11e   :  { %509 = vst [vmem:[#allocation7] sm:$0x1] %v508_v32 }
 0x11f   :  { %677 = shalt.err (!%p674_p6)
}
 0x120   :  { %s678_s2 = scalar_lea.hbm %s777_s3, 16 }
 0x121   :  { %p679_p7 = scmp.ne.s32.totalorder %s777_s3, %s678_s2  ;;  %p682_p8 = scmp.lt.u32.totalorder %s678_s2, %s777_s3 }
 0x123   :  { %p684_p9 = pnand %p682_p8, %p679_p7 }
 0x125   :  { %687 = shalt.err (!%p684_p9)
}
 0x126   :  { %519 = dma.vmem_to_hbm [thread:$0]  %s517_s13, 16, %s777_s3, [#allocation4]  }
 0x127   :  { %692 = dma.done.wait [#allocation4], 16  }
 0x128   :  { %693 = vsyncadd [#allocation4], 4294967280 }
 0x129   :  { %523 = vsyncpa [#allocation3], 1 }
 0x12a   :  { %524 = vsyncpa [#allocation6], 1 }
 0x12b   :  { %525 = vsyncpa [#allocation4], 1 }

</bundles_post_ra>
